<compile_context>
chip_gen: v7x
topology: tpu7x:2x2x1
jax: 0.10.0
libtpu: 0.0.40
codegen_flags: <defaults>
</compile_context>

<pallas_src>
import math

import jax
import jax.numpy as jnp
from jax.experimental import pallas as pl
from jax.experimental.pallas import tpu as pltpu


def _round_up(x: int, m: int) -> int:
    return ((x + m - 1) // m) * m


def _vmem_capacity_bytes() -> int:
    """Physical VMEM per TensorCore; conservative (v7x-sized) fallback."""
    try:
        cap = int(pltpu.get_tpu_info().vmem_capacity_bytes)
        if cap > 0:
            return cap
    except Exception:
        pass
    return 64 << 20


def _make_linear_kernel(has_bias: bool, acc_in_output: bool):
    """out[i,j] = sum_k x[i,k] @ w[k,j] (+ b[j]), accumulated over the K axis.

    Ref order: x, w, (bias,) out, (f32 acc scratch unless acc_in_output).
    The output block index is constant over k, so the output tile stays
    resident in VMEM across the whole reduction.
    """

    def kernel(*refs):
        if has_bias:
            x_ref, w_ref, b_ref, o_ref = refs[0], refs[1], refs[2], refs[3]
        else:
            x_ref, w_ref, o_ref = refs[0], refs[1], refs[2]
            b_ref = None
        acc_ref = o_ref if acc_in_output else refs[-1]

        k = pl.program_id(2)

        @pl.when(k == 0)
        def _init():
            acc_ref[...] = jnp.zeros_like(acc_ref)

        # (tm, tk) @ (tk, tn) -> MXU with f32 accumulation; RHS is already
        # (K, N) so no per-tile transpose is needed.
        acc_ref[...] += jnp.dot(
            x_ref[...], w_ref[...], preferred_element_type=jnp.float32
        ).astype(acc_ref.dtype)

        if has_bias or not acc_in_output:
            @pl.when(k == pl.num_programs(2) - 1)
            def _epilogue():
                res = acc_ref[...].astype(jnp.float32)
                if has_bias:
                    res = res + b_ref[...].astype(jnp.float32)
                o_ref[...] = res.astype(o_ref.dtype)

    return kernel


def prepare_weight(weight):
    """One-time layout conversion of a PyTorch-layout weight.

    (out_features, in_features) -> (in_features, out_features).
    Do this once at parameter init/load time (not per forward call), so the
    kernel's RHS is already (K, N) and never needs an in-kernel transpose.
    """
    return jnp.asarray(weight).T


def fcs_simple_linear(x, weight_t, bias=None, *, tm=None, tn=None, tk=None):
    """Pallas equivalent of FCSSimpleLinear.forward.

    x:        (B, in_features)
    weight_t: (in_features, out_features)  -- use prepare_weight() once
    bias:     (out_features,) or None
    returns   {"logits": (B, out_features)}  ==  x @ W^T + b
    """
    B, in_f = x.shape
    in_f_w, out_f = weight_t.shape
    assert in_f == in_f_w, (
        "weight_t must be (in_features, out_features); use prepare_weight()")

    has_bias = bias is not None
    out_dtype = x.dtype
    acc_in_output = jnp.dtype(out_dtype) == jnp.dtype(jnp.float32)

    xb = jnp.dtype(x.dtype).itemsize
    wb = jnp.dtype(weight_t.dtype).itemsize
    ob = jnp.dtype(out_dtype).itemsize
    bb = jnp.dtype(bias.dtype).itemsize if has_bias else 0

    # ---- per-generation VMEM budget --------------------------------------
    vmem_cap = _vmem_capacity_bytes()
    big_vmem = vmem_cap >= (96 << 20)        # v5e/v6e (128 MiB) vs v7x (64 MiB)
    vmem_limit = int(min(vmem_cap * 3 // 4, 96 << 20))
    tile_budget = vmem_limit - (8 << 20)     # headroom for compiler scratch

    # ---- tile selection (lane-dense N/K, power-of-two M) ------------------
    if tm is None:
        tm = 256 if B >= 256 else max(8, pl.next_power_of_2(B))
    Mp = _round_up(B, tm)
    m_tiles = Mp // tm

    if tn is None:
        tn_cap = 1024 if big_vmem else 512
        n_pad_min = _round_up(out_f, 128)
        # With a single M tile, split N so >= 2 parallel tiles exist (keeps
        # both v7x TensorCores busy and doubles HBM stream concurrency).
        if m_tiles == 1 and n_pad_min >= 256:
            tn_cap = min(tn_cap, _round_up(n_pad_min // 2, 128))
        tn = min(n_pad_min, tn_cap)

    if tk is None:
        tk_cap = 2048 if xb <= 2 else 1024
        if big_vmem:
            tk_cap *= 2
        tk = min(_round_up(in_f, 128), tk_cap)

    w_bufs = 3  # the weight stream is the HBM-bound one -> 3-deep if it fits

    def working_set(tm_, tn_, tk_, w_bufs_):
        ws = 2 * tm_ * tk_ * xb           # x, double-buffered
        ws += w_bufs_ * tk_ * tn_ * wb    # weight stream
        ws += 2 * tm_ * tn_ * ob          # output, double-buffered
        if has_bias:
            ws += 2 * tn_ * bb
        if not acc_in_output:
            ws += tm_ * tn_ * 4           # f32 accumulator scratch
        return ws

    # Safety: shrink until the pipelined working set fits the budget.
    while working_set(tm, tn, tk, w_bufs) > tile_budget:
        if w_bufs > 2:
            w_bufs = 2
        elif tk >= 256 and tk % 256 == 0:
            tk //= 2
        elif tn >= 256 and tn % 256 == 0:
            tn //= 2
        elif tm > 8:
            tm = max(8, tm // 2)
        else:
            break

    Mp = _round_up(B, tm)
    Np = _round_up(out_f, tn)
    Kp = _round_up(in_f, tk)
    m_tiles, n_tiles, k_tiles = Mp // tm, Np // tn, Kp // tk
    grid = (m_tiles, n_tiles, k_tiles)

    # ---- zero-pad to tile multiples (exact for matmul + bias) -------------
    xp = x if (Mp == B and Kp == in_f) else jnp.pad(
        x, ((0, Mp - B), (0, Kp - in_f)))
    wp = weight_t if (Kp == in_f and Np == out_f) else jnp.pad(
        weight_t, ((0, Kp - in_f), (0, Np - out_f)))
    if has_bias:
        bp = bias.reshape(1, out_f)
        if Np != out_f:
            bp = jnp.pad(bp, ((0, 0), (0, Np - out_f)))

    # ---- block specs -------------------------------------------------------
    x_spec = pl.BlockSpec((tm, tk), lambda i, j, k: (i, k))
    o_spec = pl.BlockSpec((tm, tn), lambda i, j, k: (i, j))

    w_index = lambda i, j, k: (k, j)
    w_spec = None
    if w_bufs > 2 and (m_tiles * n_tiles * k_tiles) >= w_bufs:
        try:
            w_spec = pl.BlockSpec((tk, tn), w_index,
                                  pipeline_mode=pl.Buffered(w_bufs))
        except TypeError:  # Pallas without pipeline_mode: default 2-deep
            w_spec = None
    if w_spec is None:
        w_spec = pl.BlockSpec((tk, tn), w_index)

    in_specs = [x_spec, w_spec]
    operands = [xp, wp]
    if has_bias:
        in_specs.append(pl.BlockSpec((1, tn), lambda i, j, k: (0, j)))
        operands.append(bp)

    scratch_shapes = [] if acc_in_output else [pltpu.VMEM((tm, tn), jnp.float32)]

    # Accurate re-streaming cost: x read once per N tile, W once per M tile.
    cost = pl.CostEstimate(
        flops=2 * Mp * Np * Kp,
        transcendentals=0,
        bytes_accessed=(
            xb * Mp * Kp * n_tiles
            + wb * Kp * Np * m_tiles
            + ob * Mp * Np
            + (bb * Np * m_tiles if has_bias else 0)
        ),
    )

    out = pl.pallas_call(
        _make_linear_kernel(has_bias, acc_in_output),
        out_shape=jax.ShapeDtypeStruct((Mp, Np), out_dtype),
        grid_spec=pltpu.PrefetchScalarGridSpec(
            num_scalar_prefetch=0,
            grid=grid,
            in_specs=in_specs,
            out_specs=o_spec,
            scratch_shapes=scratch_shapes,
        ),
        compiler_params=pltpu.CompilerParams(
            dimension_semantics=("parallel", "parallel", "arbitrary"),
            vmem_limit_bytes=vmem_limit,
        ),
        cost_estimate=cost,
    )(*operands)

    if Mp != B or Np != out_f:
        out = out[:B, :out_f]
    return {"logits": out}


def init_params(key, in_features, out_features, dtype=jnp.float32):
    """Matches nn.init.kaiming_uniform_(weight, nonlinearity='linear') and
    nn.init.constant_(bias, 0). Weight returned in PyTorch (out_f, in_f) layout."""
    bound = math.sqrt(3.0) / math.sqrt(in_features)  # gain('linear')=1, fan_in
    weight = jax.random.uniform(
        key, (out_features, in_features), dtype=dtype, minval=-bound, maxval=bound)
    bias = jnp.zeros((out_features,), dtype=dtype)
    return weight, bias


if __name__ == "__main__":
    key = jax.random.PRNGKey(0)
    k_x, k_w, k_x2, k_w2 = jax.random.split(key, 4)

    fwd = jax.jit(fcs_simple_linear, static_argnames=("tm", "tn", "tk"))

    # --- 1) small classifier-head shape, with bias -------------------------
    B1, in1, out1 = 8, 32, 16
    x1 = jax.random.normal(k_x, (B1, in1), dtype=jnp.float32)
    w1, b1 = init_params(k_w, in1, out1)
    wt1 = prepare_weight(w1)                      # one-time layout conversion
    y1 = jax.block_until_ready(fwd(x1, wt1, b1)["logits"])
    ref1 = x1 @ w1.T + b1
    assert y1.shape == (B1, out1)
    assert jnp.allclose(y1, ref1, atol=1e-3, rtol=1e-3), (
        float(jnp.max(jnp.abs(y1 - ref1))))

    # --- 2) bias=None variant (bias-less kernel, no zeros DMA) -------------
    y1n = jax.block_until_ready(fwd(x1, wt1, None)["logits"])
    assert jnp.allclose(y1n, x1 @ w1.T, atol=1e-3, rtol=1e-3), (
        float(jnp.max(jnp.abs(y1n - x1 @ w1.T))))

    # --- 3) larger shape with explicit small tiles: exercises the full
    #        (M, N, K) grid, K accumulation and the 3-deep weight buffering ---
    B2, in2, out2 = 256, 512, 384
    x2 = jax.random.normal(k_x2, (B2, in2), dtype=jnp.float32)
    w2, b2 = init_params(k_w2, in2, out2)
    wt2 = prepare_weight(w2)
    ref2 = x2 @ w2.T + b2
    y2 = jax.block_until_ready(fwd(x2, wt2, b2, tm=128, tn=128, tk=128)["logits"])
    assert y2.shape == (B2, out2)
    assert jnp.allclose(y2, ref2, atol=1e-3, rtol=1e-3), (
        float(jnp.max(jnp.abs(y2 - ref2))))

    # --- 4) same shape through the auto-tiled (per-generation caps) path ---
    y3 = jax.block_until_ready(fwd(x2, wt2, b2)["logits"])
    assert jnp.allclose(y3, ref2, atol=1e-3, rtol=1e-3), (
        float(jnp.max(jnp.abs(y3 - ref2))))

    print("KERNEL_OK")
</pallas_src>

<mosaic_0001>
module attributes {stable_mosaic.version = 11 : i64} {
  func.func @kernel(%arg0: i32, %arg1: i32, %arg2: i32, %arg3: memref<8x128xf32, #tpu.memory_space<vmem>>, %arg4: memref<128x128xf32, #tpu.memory_space<vmem>>, %arg5: memref<1x128xf32, #tpu.memory_space<vmem>>, %arg6: memref<8x128xf32, #tpu.memory_space<vmem>>) attributes {dimension_semantics = [#tpu.dimension_semantics<parallel>, #tpu.dimension_semantics<parallel>, #tpu.dimension_semantics<arbitrary>], iteration_bounds = array<i64: 1, 1, 1>, scalar_prefetch = 0 : i64, scratch_operands = 0 : i64, tpu.core_type = #tpu.core_type<tc>, window_params = [{transform_indices = @transform_0, window_bounds = array<i64: 8, 128>}, {transform_indices = @transform_1, window_bounds = array<i64: 128, 128>}, {transform_indices = @transform_2, window_bounds = array<i64: 1, 128>}, {transform_indices = @transform_3, window_bounds = array<i64: 8, 128>}]} {
    %c0_i32 = arith.constant 0 : i32
    %0 = arith.cmpi eq, %arg2, %c0_i32 : i32
    %1 = arith.extui %0 : i1 to i32
    %c0_i32_0 = arith.constant 0 : i32
    %2 = arith.cmpi ne, %1, %c0_i32_0 : i32
    scf.if %2 {
      %cst_10 = arith.constant 0.000000e+00 : f32
      %12 = vector.broadcast %cst_10 : f32 to vector<8x128xf32>
      %c0_11 = arith.constant 0 : index
      %c0_12 = arith.constant 0 : index
      %13 = vector.load %arg6[%c0_11, %c0_12] : memref<8x128xf32, #tpu.memory_space<vmem>>, vector<8x128xf32>
      tpu.vector_store %arg6[%c0_11, %c0_12], %12 {strides = array<i32>} : memref<8x128xf32, #tpu.memory_space<vmem>>, vector<8x128xf32>,
    } else {
    }
    %c0 = arith.constant 0 : index
    %c0_1 = arith.constant 0 : index
    %3 = vector.load %arg6[%c0, %c0_1] : memref<8x128xf32, #tpu.memory_space<vmem>>, vector<8x128xf32>
    %c0_2 = arith.constant 0 : index
    %c0_3 = arith.constant 0 : index
    %4 = vector.load %arg3[%c0_2, %c0_3] : memref<8x128xf32, #tpu.memory_space<vmem>>, vector<8x128xf32>
    %c0_4 = arith.constant 0 : index
    %c0_5 = arith.constant 0 : index
    %5 = vector.load %arg4[%c0_4, %c0_5] : memref<128x128xf32, #tpu.memory_space<vmem>>, vector<128x128xf32>
    %cst = arith.constant dense<0.000000e+00> : vector<8x128xf32>
    %6 = tpu.matmul %4, %5, %cst {dimension_numbers = #tpu.dot_dimension_numbers<[1], [0], [0], [1], [0, 0, 1, 1], [], []>} : vector<8x128xf32>, vector<128x128xf32>, vector<8x128xf32> -> vector<8x128xf32>
    %7 = arith.addf %3, %6 : vector<8x128xf32>
    %c0_6 = arith.constant 0 : index
    %c0_7 = arith.constant 0 : index
    %8 = vector.load %arg6[%c0_6, %c0_7] : memref<8x128xf32, #tpu.memory_space<vmem>>, vector<8x128xf32>
    tpu.vector_store %arg6[%c0_6, %c0_7], %7 {strides = array<i32>} : memref<8x128xf32, #tpu.memory_space<vmem>>, vector<8x128xf32>,
    %c0_i32_8 = arith.constant 0 : i32
    %9 = arith.cmpi eq, %arg2, %c0_i32_8 : i32
    %10 = arith.extui %9 : i1 to i32
    %c0_i32_9 = arith.constant 0 : i32
    %11 = arith.cmpi ne, %10, %c0_i32_9 : i32
    scf.if %11 {
      %c0_10 = arith.constant 0 : index
      %c0_11 = arith.constant 0 : index
      %12 = vector.load %arg6[%c0_10, %c0_11] : memref<8x128xf32, #tpu.memory_space<vmem>>, vector<8x128xf32>
      %c0_12 = arith.constant 0 : index
      %c0_13 = arith.constant 0 : index
      %13 = vector.load %arg5[%c0_12, %c0_13] : memref<1x128xf32, #tpu.memory_space<vmem>>, vector<1x128xf32>
      %14 = vector.broadcast %13 : vector<1x128xf32> to vector<8x128xf32>
      %15 = arith.addf %12, %14 : vector<8x128xf32>
      %c0_14 = arith.constant 0 : index
      %c0_15 = arith.constant 0 : index
      %16 = vector.load %arg6[%c0_14, %c0_15] : memref<8x128xf32, #tpu.memory_space<vmem>>, vector<8x128xf32>
      tpu.vector_store %arg6[%c0_14, %c0_15], %15 {strides = array<i32>} : memref<8x128xf32, #tpu.memory_space<vmem>>, vector<8x128xf32>,
    } else {
    }
    return
  }
  func.func @transform_0(%arg0: i32, %arg1: i32, %arg2: i32) -> (i32, i32) {
    %c0_i32 = arith.constant 0 : i32
    return %arg0, %arg2 : i32, i32
  }
  func.func @transform_1(%arg0: i32, %arg1: i32, %arg2: i32) -> (i32, i32) {
    %c0_i32 = arith.constant 0 : i32
    return %arg2, %arg1 : i32, i32
  }
  func.func @transform_2(%arg0: i32, %arg1: i32, %arg2: i32) -> (i32, i32) {
    %c0_i32 = arith.constant 0 : i32
    %c0_i32_0 = arith.constant 0 : i32
    return %c0_i32, %arg1 : i32, i32
  }
  func.func @transform_3(%arg0: i32, %arg1: i32, %arg2: i32) -> (i32, i32) {
    %c0_i32 = arith.constant 0 : i32
    return %arg0, %arg1 : i32, i32
  }
}

</mosaic_0001>

<bundles_post_ra>
// kernel: fcs_simple_linear.1
= control target key start
LH: loop header
LB: loop body
LE: loop exit
PB: predicated region body
PF: predicated region fallthrough
CT: control target
= control target key end

     0   :  { %v242_v3 = vmov 0.0|0.0   ;;  %vm243_vm0 = vmmov 0   ;;  %v244_v6 = vmov 0.0   ;;  %s332_s0 = inlined_call_operand.vmem [shape: f32[8,128], index: 0, kind: input, shape index: {}]   ;;  %s333_s1 = inlined_call_operand.vmem [shape: f32[128,128], index: 1, kind: input, shape index: {}]   ;;  %s334_s2 = inlined_call_operand.vmem [shape: f32[1,128], index: 2, kind: input, shape index: {}]   ;;  %s335_s3 = inlined_call_operand.hbm [shape: f32[8,128], index: 3, kind: output, shape index: {}]  }
   0x1   :  { %v22_v0 = vld [vmem:[%s333_s1] sm:$0xff]  ;;  %v23_v1 = vld [vmem:[%s333_s1 + $0x8] sm:$0xff]  ;;  %v24_v2 = vld [vmem:[%s333_s1 + $0x10] sm:$0xff]  ;;  %190 = vmatprep.subr.bf16.mxu0 %v242_v3  ;;  %187 = vmatprep.mubr.msk.f32.mxu0 %vm243_vm0, %v244_v6 }
   0x2   :  { %v191_v4 = vpack.c.bf16 %v23_v1, %v22_v0  ;;  %v25_v5 = vld [vmem:[%s333_s1 + $0x18] sm:$0xff]  ;;  %v26_v8 = vld [vmem:[%s333_s1 + $0x20] sm:$0xff]  ;;  %v27_v9 = vld [vmem:[%s333_s1 + $0x28] sm:$0xff] }
   0x3   :  { %v194_v7 = vpack.c.bf16 %v25_v5, %v24_v2 }
   0x4   :  { %192 = vmatpush3.bf16.msra.mxu0 %v191_v4 }
   0x5   :  { %193 = vmatprep.subr.bf16.mxu0 %v242_v3 }
   0x6   :  { %8 = vsyncpa [#allocation3], 0  ;;  %v197_v10 = vpack.c.bf16 %v27_v9, %v26_v8  ;;  %v28_v11 = vld [vmem:[%s333_s1 + $0x30] sm:$0xff]  ;;  %v29_v12 = vld [vmem:[%s333_s1 + $0x38] sm:$0xff]  ;;  %s245_s21 = smov [#allocation2]  }
   0x7   :  { %v200_v13 = vpack.c.bf16 %v29_v12, %v28_v11  ;;  %v30_v14 = vld [vmem:[%s333_s1 + $0x40] sm:$0xff]  ;;  %v31_v15 = vld [vmem:[%s333_s1 + $0x48] sm:$0xff]  ;;  %v32_v17 = vld [vmem:[%s333_s1 + $0x50] sm:$0xff]  ;;  %s129_s22 = sshll.u32 %s245_s21, 4  ;;  %s130_s22 = int_to_ptr.vmem [resolvable:$true] %s129_s22 }
   0x8   :  { %195 = vmatpush3.bf16.msra.mxu0 %v194_v7  ;;  %v203_v16 = vpack.c.bf16 %v31_v15, %v30_v14  ;;  %v33_v18 = vld [vmem:[%s333_s1 + $0x58] sm:$0xff]  ;;  %v34_v20 = vld [vmem:[%s333_s1 + $0x60] sm:$0xff]  ;;  %v35_v21 = vld [vmem:[%s333_s1 + $0x68] sm:$0xff]  ;;  %p223_p1 = scmp.lt.s32.totalorder %s130_s22, %s130_s22 }
   0x9   :  { %196 = vmatprep.subr.bf16.mxu0 %v242_v3  ;;  %v206_v19 = vpack.c.bf16 %v33_v18, %v32_v17  ;;  %v209_v22 = vpack.c.bf16 %v35_v21, %v34_v20  ;;  %v36_v23 = vld [vmem:[%s333_s1 + $0x70] sm:$0xff]  ;;  %v37_v24 = vld [vmem:[%s333_s1 + $0x78] sm:$0xff]  ;;  %v21_v26 = vld [vmem:[%s332_s0] sm:$0xff]  ;;  %s218_s1 = scalar_lea.vmem %s130_s22, 128 }
   0xa   :  { %v212_v25 = vpack.c.bf16 %v37_v24, %v36_v23  ;;  %v137_v28 = vld [vmem:[%s334_s2] ss:$0 sm:$0xff]  ;;  %p219_p0 = scmp.ne.s32.totalorder %s130_s22, %s218_s1  ;;  %p224_p2 = scmp.lt.s32.totalorder %s218_s1, %s218_s1 }
   0xc   :  { %198 = vmatpush3.bf16.msra.mxu0 %v197_v10  ;;  %p225_p3 = por %p224_p2, %p223_p1 }
   0xd   :  { %199 = vmatprep.subr.bf16.mxu0 %v242_v3 }
   0xe   :  { %p226_p4 = pnand %p225_p3, %p219_p0 }
  0x10   :  { %201 = vmatpush3.bf16.msra.mxu0 %v200_v13 }
  0x11   :  { %202 = vmatprep.subr.bf16.mxu0 %v242_v3 }
  0x14   :  { %204 = vmatpush3.bf16.msra.mxu0 %v203_v16 }
  0x15   :  { %205 = vmatprep.subr.bf16.mxu0 %v242_v3 }
  0x18   :  { %207 = vmatpush3.bf16.msra.mxu0 %v206_v19 }
  0x19   :  { %208 = vmatprep.subr.bf16.mxu0 %v242_v3 }
  0x1c   :  { %210 = vmatpush3.bf16.msra.mxu0 %v209_v22 }
  0x1d   :  { %211 = vmatprep.subr.bf16.mxu0 %v242_v3 }
  0x20   :  { %213 = vmatpush3.bf16.msra.mxu0 %v212_v25 }
  0x23   :  { %188 = vmatmul.mubr.f32.vlgmr.msra.gmra.mrb[0].mxu0 %v21_v26 }
  0xf6   :  { %v104_v27 = vpop.f32.mrb[0].mxu0 }
  0xf7   :  { %v189_v29 = vpop.f32.mrb[1].mxu0  ;;  %v121_v30 = vadd.f32 %v137_v28, %v104_v27 }
  0xf9   :  { %122 = vst [vmem:[#allocation2] sm:$0xff] %v121_v30 }
  0xfa   :  { %229 = shalt.err (!%p226_p4)
}
  0xfb   :  { %s230_s24 = scalar_lea.hbm %s335_s3, 128 }
  0xfc   :  { %p231_p5 = scmp.ne.s32.totalorder %s335_s3, %s230_s24  ;;  %p234_p6 = scmp.lt.u32.totalorder %s230_s24, %s335_s3 }
  0xfe   :  { %p236_p7 = pnand %p234_p6, %p231_p5 }
 0x100   :  { %239 = shalt.err (!%p236_p7)
}
 0x101   :  { %132 = dma.vmem_to_hbm [thread:$0]  %s130_s22, 128, %s335_s3, [#allocation3]  }
 0x102   :  { %240 = dma.done.wait [#allocation3], 128  }
 0x103   :  { %241 = vsyncadd [#allocation3], 4294967168 }
 0x104   :  { %136 = vsyncpa [#allocation3], 1 }

</bundles_post_ra>
